<compile_context>
chip_gen: v5e
topology: v5e:2x2
jax: 0.10.0
libtpu: 0.0.40
codegen_flags: <defaults>
</compile_context>

<pallas_src>
import jax
import jax.numpy as jnp
from jax import lax
from jax.experimental import pallas as pl
from jax.experimental.pallas import tpu as pltpu

EPS = 1e-10            # matches the module-level `eps` in the PyTorch spec
_PLANE_FACTOR = 10     # conservative count of live (tb, strip, tn) f32 temps
_LANE = 128
_SUBLANE = 8


def _round_up(x, m):
    return (x + m - 1) // m * m


def _vmem_params():
    """Generation-aware (temp_budget_bytes, vmem_limit_bytes)."""
    kind = ""
    try:
        kind = jax.devices()[0].device_kind.lower()
    except Exception:
        pass
    if "v5" in kind:                 # v5e: 16 MiB scoped-VMEM default — stay inside it
        return 10 << 20, 14 << 20
    if "v6" in kind:                 # v6e: 128 MiB physical VMEM — use it for larger TB
        return 56 << 20, 96 << 20
    if "v7" in kind:                 # v7x: 64 MiB physical per TensorCore
        return 28 << 20, 48 << 20
    try:                             # unknown part: derive conservatively from HW info
        cap = int(pltpu.get_tpu_info().vmem_capacity_bytes)
        return max(8 << 20, cap // 4), max(16 << 20, cap // 2)
    except Exception:
        return 12 << 20, 32 << 20


def _live_bytes(tb, strip, tn, n_pad):
    """Rough per-grid-step VMEM upper bound: pairwise strip temporaries, the
    (tb, tn) partial accumulators, and double-buffered inputs (both views)."""
    planes = _PLANE_FACTOR * tb * strip * tn * 4
    partials = 4 * tb * tn * 4
    io = 3 * 2 * tb * (n_pad + tn) * 4
    return planes + partials + io


def _choose_tiles(B, N, temp_budget, batch_tile=None, column_tile=None):
    """Pick (tb, tn, strip, n_pad): batch tile, column tile, i-strip, padded N."""
    if N <= _LANE:
        n_pad = _round_up(max(N, 1), _SUBLANE)
        strip = n_pad                 # single static strip, no inner loop
        tn = n_pad                    # single column pass (column_tile ignored)
    else:
        n_pad = _round_up(N, _LANE)
        strip = _LANE                 # 128-wide i-strips
        if column_tile is not None:
            tn = int(column_tile)
            if tn % _LANE or n_pad % tn:
                raise ValueError(
                    f"column_tile must be a multiple of 128 dividing {n_pad}, "
                    f"got {column_tile}")
        else:
            # Largest 128-multiple divisor of n_pad whose strip footprint fits
            # the budget at the minimum batch tile.  Replaces v2's "shrink TB
            # only" strategy — mandatory for large N on v7x's 64 MiB VMEM.
            nk = n_pad // _LANE
            tn = _LANE
            for k in range(nk, 0, -1):
                if nk % k == 0 and _live_bytes(_SUBLANE, strip, k * _LANE,
                                               n_pad) <= temp_budget:
                    tn = k * _LANE
                    break

    if batch_tile is not None:
        tb = int(batch_tile)
        if tb <= 0:
            raise ValueError(f"batch_tile must be positive, got {batch_tile}")
        if tb >= B:
            tb = B
        elif tb % _SUBLANE:
            # Snap to the (8, 128) sublane-tiling constraint instead of
            # failing to lower (perf-only change).
            tb = max(_SUBLANE, (tb // _SUBLANE) * _SUBLANE)
    elif B <= _SUBLANE:
        tb = B                        # one full-height block (always legal)
    else:
        bp8 = _round_up(B, _SUBLANE)
        tb = _SUBLANE
        while tb * 2 <= bp8 and _live_bytes(tb * 2, strip, tn, n_pad) <= temp_budget:
            tb *= 2
        # Keep >= 2 steps on the "parallel" batch axis so both TensorCores of
        # a v7x chip get work via megacore sharding; ~0.35 us cost on 1-TC chips.
        tb = min(tb, max(_SUBLANE, (bp8 // 2) // _SUBLANE * _SUBLANE))
    return tb, tn, strip, n_pad


def _rank_criterion_kernel(xj_ref, yj_ref, mj_ref, xi_ref, yi_ref, mi_ref,
                           out_ref):
    """One (batch-tile, column-tile) grid step.

    xj/yj/mj : (tb, tn)            — j-side column tile (BlockSpec-selected).
    xi/yi/mi : (n_strips, tb, strip) — all i-strips for this batch tile
               (block index is j-invariant, so they stay VMEM-resident).
    out      : (tb, 2) f32 — [:, 0] = num, [:, 1] = den, accumulated over the
               "arbitrary" column axis (pl.when init at j == 0).
    """
    j = pl.program_id(1)

    @pl.when(j == 0)
    def _init():
        out_ref[...] = jnp.zeros_like(out_ref)

    n_strips, tb, _ = xi_ref.shape
    tn = xj_ref.shape[1]

    # j-side operands for this column tile (loop-invariant).
    x_j = xj_ref[...]
    y_j = yj_ref[...]
    m_j = mj_ref[...]

    def contrib(x_i, y_i, m_i):
        # Pairwise (tb, strip, tn) planes; element [b, ii, jj] =
        #   t[b, j0 + jj] - t[b, i0 + ii]  (== torch unsqueeze(1) - unsqueeze(2)).
        # TODO(synk): audit these [:, :, None] column broadcasts in a bundle
        # dump; switch to MXU outer products if they saturate the XLU.
        y_d = y_j[:, None, :] - y_i[:, :, None]
        x_d = x_j[:, None, :] - x_i[:, :, None]
        w = jnp.where(y_d > 0.0, m_j[:, None, :] * m_i[:, :, None], 0.0)
        # clip(y_d, 0, 0.1): the lower clamp is redundant because w zeroes
        # every element with y_d <= 0 (and pred is multiplied by w).
        pred = jnp.maximum(jnp.minimum(y_d, 0.1) - x_d, 0.0) * w
        # Reduce the strip (sublane) axis immediately so only (tb, tn)
        # partials stay live across the loop.
        return jnp.sum(pred * pred, axis=1), jnp.sum(w, axis=1)

    if n_strips == 1:
        num_part, den_part = contrib(xi_ref[0], yi_ref[0], mi_ref[0])
    else:
        def body(s, carry):
            nc, dc = contrib(xi_ref[s], yi_ref[s], mi_ref[s])
            return carry[0] + nc, carry[1] + dc

        zeros = jnp.zeros((tb, tn), jnp.float32)
        num_part, den_part = lax.fori_loop(
            0, n_strips, body, (zeros, zeros), unroll=n_strips <= 4)

    # Final lane reduction: for wide tiles use the otherwise-idle MXU so the
    # XLU (already serving the column broadcasts) is not the binding slot.
    if tn >= _LANE:
        ones = jnp.ones((tn, 1), jnp.float32)
        num_b = jnp.dot(num_part, ones, preferred_element_type=jnp.float32)
        den_b = jnp.dot(den_part, ones, preferred_element_type=jnp.float32)
    else:
        num_b = jnp.sum(num_part, axis=1, keepdims=True)
        den_b = jnp.sum(den_part, axis=1, keepdims=True)

    out_ref[:, 0:1] += num_b
    out_ref[:, 1:2] += den_b


def rank_criterion(x, y, mask, *, batch_tile=None, column_tile=None):
    """Pallas TPU implementation of Rank_Criterion.forward(x, y, mask) -> scalar."""
    B, N = x.shape[0], x.shape[1]

    # Glue (pure layout): channel selection + dtype normalization.
    x1 = x[:, :, 1].astype(jnp.float32)
    y1 = y[:, :, 1].astype(jnp.float32)
    m = mask.astype(jnp.float32)

    temp_budget, vmem_limit = _vmem_params()
    tb, tn, strip, n_pad = _choose_tiles(B, N, temp_budget, batch_tile, column_tile)

    gb = pl.cdiv(B, tb)
    b_pad = gb * tb
    gj = n_pad // tn
    n_strips = n_pad // strip

    if b_pad != B or n_pad != N:
        # Padded rows/columns carry mask == 0 -> contribute 0 to num and den.
        pad = ((0, b_pad - B), (0, n_pad - N))
        x1 = jnp.pad(x1, pad)
        y1 = jnp.pad(y1, pad)
        m = jnp.pad(m, pad)

    # i-side view: (n_strips, B, strip) so the kernel's strip loop indexes the
    # leading ref axis (no dynamic lane slicing).  Host-side layout glue only.
    def strip_view(t):
        return t.reshape(b_pad, n_strips, strip).transpose(1, 0, 2)

    xi, yi, mi = strip_view(x1), strip_view(y1), strip_view(m)

    col_spec = pl.BlockSpec((tb, tn), lambda b, j: (b, j))                    # j-side tile
    row_spec = pl.BlockSpec((n_strips, tb, strip), lambda b, j: (0, b, 0))    # all i-strips
    out_spec = pl.BlockSpec((tb, 2), lambda b, j: (b, 0))                     # j-accumulated

    out = pl.pallas_call(
        _rank_criterion_kernel,
        out_shape=jax.ShapeDtypeStruct((b_pad, 2), jnp.float32),
        grid=(gb, gj),
        in_specs=[col_spec, col_spec, col_spec, row_spec, row_spec, row_spec],
        out_specs=out_spec,
        compiler_params=pltpu.CompilerParams(
            dimension_semantics=("parallel", "arbitrary"),
            vmem_limit_bytes=vmem_limit),
    )(x1, y1, m, xi, yi, mi)

    num = out[:B, 0]
    den = out[:B, 1]
    # Exact per-batch division + mean in plain JAX (O(B), negligible).
    return jnp.mean(num / jnp.maximum(den, jnp.float32(EPS)))


def rank_criterion_ref(x, y, mask):
    """Pure-JAX reference mirroring the PyTorch forward exactly."""
    x1 = x[:, :, 1].astype(jnp.float32)
    y1 = y[:, :, 1].astype(jnp.float32)
    m = mask.astype(jnp.float32)
    mask2 = m[:, None, :] * m[:, :, None]
    y_diff_raw = y1[:, None, :] - y1[:, :, None]
    y_mask = (y_diff_raw > 0.0).astype(jnp.float32)
    y_diff = jnp.clip(y_diff_raw, 0.0, 0.1)
    x_diff = x1[:, None, :] - x1[:, :, None]
    pred = jnp.maximum(y_diff - x_diff, 0.0) * y_mask * mask2
    num = jnp.sum(pred ** 2, axis=(1, 2))
    den = jnp.maximum(jnp.sum(y_mask * mask2, axis=(1, 2)), EPS)
    return jnp.mean(num / den)


if __name__ == "__main__":
    C = 2

    def make(key, B, N):
        kx, ky, km = jax.random.split(key, 3)
        xx = jax.random.normal(kx, (B, N, C), dtype=jnp.float32)
        yy = jax.random.normal(ky, (B, N, C), dtype=jnp.float32)
        mm = (jax.random.uniform(km, (B, N)) > 0.3).astype(jnp.float32)
        return xx, yy, mm

    k1, k2, k3 = jax.random.split(jax.random.PRNGKey(0), 3)

    # 1) Tiny shape: single block, single strip, single column tile.
    x, y, m = make(k1, 2, 8)
    out = jax.block_until_ready(rank_criterion(x, y, m))
    ref = jax.block_until_ready(rank_criterion_ref(x, y, m))
    assert jnp.isfinite(out), "non-finite output (tiny path)"
    assert jnp.allclose(out, ref, rtol=2e-5, atol=1e-6), (out, ref)

    # 2) Batch tiling + batch padding (parallel grid axis).
    x, y, m = make(k2, 20, 16)
    out = jax.block_until_ready(rank_criterion(x, y, m, batch_tile=8))
    ref = jax.block_until_ready(rank_criterion_ref(x, y, m))
    assert jnp.isfinite(out), "non-finite output (batch-tiled path)"
    assert jnp.allclose(out, ref, rtol=2e-5, atol=1e-6), (out, ref)

    # 3) Column tiling ("arbitrary" axis) + strip fori_loop + MXU lane reduce.
    x, y, m = make(k3, 8, 256)
    out = jax.block_until_ready(rank_criterion(x, y, m, column_tile=128))
    ref = jax.block_until_ready(rank_criterion_ref(x, y, m))
    assert jnp.isfinite(out), "non-finite output (column-tiled path)"
    assert jnp.allclose(out, ref, rtol=2e-5, atol=1e-6), (out, ref)

    print("KERNEL_OK")
</pallas_src>

<mosaic_0001>
module attributes {stable_mosaic.version = 11 : i64} {
  func.func @_rank_criterion_kernel(%arg0: i32, %arg1: i32, %arg2: memref<2x8xf32, #tpu.memory_space<vmem>>, %arg3: memref<2x8xf32, #tpu.memory_space<vmem>>, %arg4: memref<2x8xf32, #tpu.memory_space<vmem>>, %arg5: memref<1x2x8xf32, #tpu.memory_space<vmem>>, %arg6: memref<1x2x8xf32, #tpu.memory_space<vmem>>, %arg7: memref<1x2x8xf32, #tpu.memory_space<vmem>>, %arg8: memref<2x2xf32, #tpu.memory_space<vmem>>) attributes {dimension_semantics = [#tpu.dimension_semantics<parallel>, #tpu.dimension_semantics<arbitrary>], iteration_bounds = array<i64: 1, 1>, scalar_prefetch = 0 : i64, scratch_operands = 0 : i64, tpu.core_type = #tpu.core_type<tc>, window_params = [{transform_indices = @transform_0, window_bounds = array<i64: 2, 8>}, {transform_indices = @transform_1, window_bounds = array<i64: 2, 8>}, {transform_indices = @transform_2, window_bounds = array<i64: 2, 8>}, {transform_indices = @transform_3, window_bounds = array<i64: 1, 2, 8>}, {transform_indices = @transform_4, window_bounds = array<i64: 1, 2, 8>}, {transform_indices = @transform_5, window_bounds = array<i64: 1, 2, 8>}, {transform_indices = @transform_6, window_bounds = array<i64: 2, 2>}]} {
    %c0_i32 = arith.constant 0 : i32
    %0 = arith.cmpi eq, %arg1, %c0_i32 : i32
    %1 = arith.extui %0 : i1 to i32
    %c0_i32_0 = arith.constant 0 : i32
    %2 = arith.cmpi ne, %1, %c0_i32_0 : i32
    scf.if %2 {
      %cst_29 = arith.constant 0.000000e+00 : f32
      %50 = vector.broadcast %cst_29 : f32 to vector<2x2xf32>
      %c0_30 = arith.constant 0 : index
      %c0_31 = arith.constant 0 : index
      %51 = vector.load %arg8[%c0_30, %c0_31] : memref<2x2xf32, #tpu.memory_space<vmem>>, vector<2x2xf32>
      tpu.vector_store %arg8[%c0_30, %c0_31], %50 {strides = array<i32>} : memref<2x2xf32, #tpu.memory_space<vmem>>, vector<2x2xf32>,
    } else {
    }
    %c0 = arith.constant 0 : index
    %c0_1 = arith.constant 0 : index
    %3 = vector.load %arg2[%c0, %c0_1] : memref<2x8xf32, #tpu.memory_space<vmem>>, vector<2x8xf32>
    %c0_2 = arith.constant 0 : index
    %c0_3 = arith.constant 0 : index
    %4 = vector.load %arg3[%c0_2, %c0_3] : memref<2x8xf32, #tpu.memory_space<vmem>>, vector<2x8xf32>
    %c0_4 = arith.constant 0 : index
    %c0_5 = arith.constant 0 : index
    %5 = vector.load %arg4[%c0_4, %c0_5] : memref<2x8xf32, #tpu.memory_space<vmem>>, vector<2x8xf32>
    %c0_6 = arith.constant 0 : index
    %c0_7 = arith.constant 0 : index
    %c0_8 = arith.constant 0 : index
    %6 = vector.load %arg5[%c0_6, %c0_7, %c0_8] : memref<1x2x8xf32, #tpu.memory_space<vmem>>, vector<1x2x8xf32>
    %7 = vector.shape_cast %6 : vector<1x2x8xf32> to vector<2x8xf32>
    %c0_9 = arith.constant 0 : index
    %c0_10 = arith.constant 0 : index
    %c0_11 = arith.constant 0 : index
    %8 = vector.load %arg6[%c0_9, %c0_10, %c0_11] : memref<1x2x8xf32, #tpu.memory_space<vmem>>, vector<1x2x8xf32>
    %9 = vector.shape_cast %8 : vector<1x2x8xf32> to vector<2x8xf32>
    %c0_12 = arith.constant 0 : index
    %c0_13 = arith.constant 0 : index
    %c0_14 = arith.constant 0 : index
    %10 = vector.load %arg7[%c0_12, %c0_13, %c0_14] : memref<1x2x8xf32, #tpu.memory_space<vmem>>, vector<1x2x8xf32>
    %11 = vector.shape_cast %10 : vector<1x2x8xf32> to vector<2x8xf32>
    %12 = vector.shape_cast %4 : vector<2x8xf32> to vector<2x1x8xf32>
    %13 = vector.shape_cast %9 : vector<2x8xf32> to vector<2x8x1xf32>
    %14 = vector.broadcast %12 : vector<2x1x8xf32> to vector<2x8x8xf32>
    %15 = vector.broadcast %13 : vector<2x8x1xf32> to vector<2x8x8xf32>
    %16 = arith.subf %14, %15 : vector<2x8x8xf32>
    %17 = vector.shape_cast %3 : vector<2x8xf32> to vector<2x1x8xf32>
    %18 = vector.shape_cast %7 : vector<2x8xf32> to vector<2x8x1xf32>
    %19 = vector.broadcast %17 : vector<2x1x8xf32> to vector<2x8x8xf32>
    %20 = vector.broadcast %18 : vector<2x8x1xf32> to vector<2x8x8xf32>
    %21 = arith.subf %19, %20 : vector<2x8x8xf32>
    %cst = arith.constant 0.000000e+00 : f32
    %22 = vector.broadcast %cst : f32 to vector<2x8x8xf32>
    %23 = arith.cmpf ogt, %16, %22 : vector<2x8x8xf32>
    %24 = vector.shape_cast %5 : vector<2x8xf32> to vector<2x1x8xf32>
    %25 = vector.shape_cast %11 : vector<2x8xf32> to vector<2x8x1xf32>
    %26 = vector.broadcast %24 : vector<2x1x8xf32> to vector<2x8x8xf32>
    %27 = vector.broadcast %25 : vector<2x8x1xf32> to vector<2x8x8xf32>
    %28 = arith.mulf %26, %27 : vector<2x8x8xf32>
    %cst_15 = arith.constant 0.000000e+00 : f32
    %29 = vector.broadcast %cst_15 : f32 to vector<2x8x8xf32>
    %30 = arith.select %23, %28, %29 : vector<2x8x8xi1>, vector<2x8x8xf32>
    %cst_16 = arith.constant 1.000000e-01 : f32
    %31 = vector.broadcast %cst_16 : f32 to vector<2x8x8xf32>
    %32 = arith.minimumf %16, %31 : vector<2x8x8xf32>
    %33 = arith.subf %32, %21 : vector<2x8x8xf32>
    %cst_17 = arith.constant 0.000000e+00 : f32
    %34 = vector.broadcast %cst_17 : f32 to vector<2x8x8xf32>
    %35 = arith.maximumf %33, %34 : vector<2x8x8xf32>
    %36 = arith.mulf %35, %30 : vector<2x8x8xf32>
    %37 = arith.mulf %36, %36 : vector<2x8x8xf32>
    %cst_18 = arith.constant dense<0.000000e+00> : vector<2x8xf32>
    %38 = vector.multi_reduction <add>, %37, %cst_18 [1] : vector<2x8x8xf32> to vector<2x8xf32>
    %cst_19 = arith.constant dense<0.000000e+00> : vector<2x8xf32>
    %39 = vector.multi_reduction <add>, %30, %cst_19 [1] : vector<2x8x8xf32> to vector<2x8xf32>
    %cst_20 = arith.constant dense<0.000000e+00> : vector<2xf32>
    %40 = vector.multi_reduction <add>, %38, %cst_20 [1] : vector<2x8xf32> to vector<2xf32>
    %41 = vector.shape_cast %40 : vector<2xf32> to vector<2x1xf32>
    %cst_21 = arith.constant dense<0.000000e+00> : vector<2xf32>
    %42 = vector.multi_reduction <add>, %39, %cst_21 [1] : vector<2x8xf32> to vector<2xf32>
    %43 = vector.shape_cast %42 : vector<2xf32> to vector<2x1xf32>
    %c0_22 = arith.constant 0 : index
    %c0_23 = arith.constant 0 : index
    %44 = vector.load %arg8[%c0_22, %c0_23] : memref<2x2xf32, #tpu.memory_space<vmem>>, vector<2x1xf32>
    %45 = arith.addf %44, %41 : vector<2x1xf32>
    %c0_24 = arith.constant 0 : index
    %c0_25 = arith.constant 0 : index
    %46 = vector.load %arg8[%c0_24, %c0_25] : memref<2x2xf32, #tpu.memory_space<vmem>>, vector<2x1xf32>
    tpu.vector_store %arg8[%c0_24, %c0_25], %45 {strides = array<i32>} : memref<2x2xf32, #tpu.memory_space<vmem>>, vector<2x1xf32>,
    %c0_26 = arith.constant 0 : index
    %c1 = arith.constant 1 : index
    %47 = vector.load %arg8[%c0_26, %c1] : memref<2x2xf32, #tpu.memory_space<vmem>>, vector<2x1xf32>
    %48 = arith.addf %47, %43 : vector<2x1xf32>
    %c0_27 = arith.constant 0 : index
    %c1_28 = arith.constant 1 : index
    %49 = vector.load %arg8[%c0_27, %c1_28] : memref<2x2xf32, #tpu.memory_space<vmem>>, vector<2x1xf32>
    tpu.vector_store %arg8[%c0_27, %c1_28], %48 {strides = array<i32>} : memref<2x2xf32, #tpu.memory_space<vmem>>, vector<2x1xf32>,
    return
  }
  func.func @transform_0(%arg0: i32, %arg1: i32) -> (i32, i32) {
    %c0_i32 = arith.constant 0 : i32
    return %arg0, %arg1 : i32, i32
  }
  func.func @transform_1(%arg0: i32, %arg1: i32) -> (i32, i32) {
    %c0_i32 = arith.constant 0 : i32
    return %arg0, %arg1 : i32, i32
  }
  func.func @transform_2(%arg0: i32, %arg1: i32) -> (i32, i32) {
    %c0_i32 = arith.constant 0 : i32
    return %arg0, %arg1 : i32, i32
  }
  func.func @transform_3(%arg0: i32, %arg1: i32) -> (i32, i32, i32) {
    %c0_i32 = arith.constant 0 : i32
    %c0_i32_0 = arith.constant 0 : i32
    %c0_i32_1 = arith.constant 0 : i32
    return %c0_i32, %arg0, %c0_i32_0 : i32, i32, i32
  }
  func.func @transform_4(%arg0: i32, %arg1: i32) -> (i32, i32, i32) {
    %c0_i32 = arith.constant 0 : i32
    %c0_i32_0 = arith.constant 0 : i32
    %c0_i32_1 = arith.constant 0 : i32
    return %c0_i32, %arg0, %c0_i32_0 : i32, i32, i32
  }
  func.func @transform_5(%arg0: i32, %arg1: i32) -> (i32, i32, i32) {
    %c0_i32 = arith.constant 0 : i32
    %c0_i32_0 = arith.constant 0 : i32
    %c0_i32_1 = arith.constant 0 : i32
    return %c0_i32, %arg0, %c0_i32_0 : i32, i32, i32
  }
  func.func @transform_6(%arg0: i32, %arg1: i32) -> (i32, i32) {
    %c0_i32 = arith.constant 0 : i32
    %c0_i32_0 = arith.constant 0 : i32
    return %arg0, %c0_i32 : i32, i32
  }
}

</mosaic_0001>

<bundles_post_ra>
// kernel: tpu_custom_call.1
= control target key start
LH: loop header
LB: loop body
LE: loop exit
PB: predicated region body
PF: predicated region fallthrough
CT: control target
= control target key end

     0   :  { %11 = vsyncpa [#allocation3], 0  ;;  %s446_s0 = inlined_call_operand.hbm [shape: f32[2,8], index: 0, kind: input, shape index: {}]   ;;  %s447_s1 = inlined_call_operand.hbm [shape: f32[2,8], index: 1, kind: input, shape index: {}]   ;;  %s448_s2 = inlined_call_operand.hbm [shape: f32[2,8], index: 2, kind: input, shape index: {}]   ;;  %s449_s3 = inlined_call_operand.vmem [shape: f32[1,2,8], index: 3, kind: input, shape index: {}]   ;;  %s450_s4 = inlined_call_operand.hbm [shape: f32[1,2,8], index: 4, kind: input, shape index: {}]   ;;  %s451_s5 = inlined_call_operand.vmem [shape: f32[1,2,8], index: 5, kind: input, shape index: {}]   ;;  %s452_s6 = inlined_call_operand.hbm [shape: f32[2,2], index: 6, kind: output, shape index: {}]  }
   0x1   :  { %12 = vsyncpa [#allocation6], 0 }
   0x2   :  { %13 = vsyncpa [#allocation9], 0  ;;  %s31_s23 = sshll.u32 %s447_s1, 4  ;;  %s32_s23 = int_to_ptr.hbm [resolvable:$true] %s31_s23 }
   0x3   :  { %14 = vsyncpa [#allocation4], 0  ;;  %s380_s24 = smov [#allocation5]   ;;  %s20_s28 = sshll.u32 %s446_s0, 4  ;;  %s21_s28 = int_to_ptr.hbm [resolvable:$true] %s20_s28 }
   0x4   :  { %s33_s25 = sshll.u32 %s380_s24, 4  ;;  %s381_s29 = smov [#allocation2]   ;;  %s34_s25 = int_to_ptr.vmem [resolvable:$true] %s33_s25 }
   0x5   :  { %36 = dma.hbm_to_vmem [thread:$0]  %s32_s23, 32, %s34_s25, [#allocation6]  }
   0x6   :  { %s22_s30 = sshll.u32 %s381_s29, 4  ;;  %s42_s9 = sshll.u32 %s448_s2, 4  ;;  %s23_s30 = int_to_ptr.vmem [resolvable:$true] %s22_s30  ;;  %s43_s9 = int_to_ptr.hbm [resolvable:$true] %s42_s9 }
   0x7   :  { %25 = dma.hbm_to_vmem [thread:$0]  %s21_s28, 32, %s23_s30, [#allocation3]  }
   0x8   :  { %s55_s11 = sshll.u32 %s450_s4, 4  ;;  %s382_s12 = smov [#allocation7]   ;;  %s56_s11 = int_to_ptr.hbm [resolvable:$true] %s55_s11 }
   0x9   :  { %s44_s13 = sshll.u32 %s382_s12, 4  ;;  %s383_s0 = smov [#allocation8]   ;;  %s45_s13 = int_to_ptr.vmem [resolvable:$true] %s44_s13 }
   0xa   :  { %47 = dma.hbm_to_vmem [thread:$0]  %s43_s9, 32, %s45_s13, [#allocation6]  }
   0xb   :  { %s57_s14 = sshll.u32 %s383_s0, 4  ;;  %s58_s14 = int_to_ptr.vmem [resolvable:$true] %s57_s14 }
   0xc   :  { %60 = dma.hbm_to_vmem [thread:$0]  %s56_s11, 32, %s58_s14, [#allocation9]  }
   0xd   :  { %372 = dma.done.wait [#allocation3], 32  }
   0xe   :  { %373 = vsyncadd [#allocation3], 4294967264 }
   0xf   :  { %374 = dma.done.wait [#allocation6], 64  }
  0x10   :  { %375 = vsyncadd [#allocation6], 4294967232 }
  0x11   :  { %376 = dma.done.wait [#allocation9], 32  }
  0x12   :  { %377 = vsyncadd [#allocation9], 4294967264  ;;  %v94_v0 = vlaneseq  ;;  %v89_v2 = vld [vmem:[#allocation8] sm:$0x3]  ;;  %v88_v3 = vld [vmem:[%s449_s3] sm:$0x3] }
  0x13   :  { %v90_v4 = vld [vmem:[%s451_s5] sm:$0x3]  ;;  %v93_v5 = vperm.slane %v89_v2, 0  ;;  %v115_v6 = vperm.slane %v88_v3, 0  ;;  %v100_v8 = vperm.slane %v89_v2, 1  ;;  %v122_v9 = vperm.slane %v88_v3, 1 }
  0x14   :  { %v95_v1 = vshrl.u32 %v94_v0, 7  ;;  %v139_v7 = vperm.slane %v90_v4, 0  ;;  %v146_v10 = vperm.slane %v90_v4, 1  ;;  %v87_v11 = vld [vmem:[#allocation7] sm:$0x3]  ;;  %vm171_vm0 = vcmask 64512  }
  0x15   :  { %v86_v12 = vld [vmem:[#allocation5] sm:$0x3]  ;;  %v85_v13 = vld [vmem:[#allocation2] sm:$0x3]  ;;  %v153_v14 = vperm.slane %v87_v11, 0  ;;  %v138_v24 = vrot.slane %v87_v11, 1 }
  0x16   :  { %250 = vset.pattern.permute.xlu1 %v95_v1  ;;  %249 = vset.pattern.permute.xlu0 %v95_v1  ;;  %v107_v16 = vperm.slane %v86_v12, 0  ;;  %v129_v17 = vperm.slane %v85_v13, 0  ;;  %v92_v23 = vrot.slane %v86_v12, 1  ;;  %v114_v26 = vrot.slane %v85_v13, 1  ;;  %s385_s3 = smov [#allocation10]   ;;  %s231_s19 = sshll.u32 %s452_s6, 4  ;;  %s232_s19 = int_to_ptr.hbm [resolvable:$true] %s231_s19 }
  0x17   :  { %251 = vset.pattern.permute.xlu2 %v95_v1  ;;  %v154_v32 = vperm.slane %v138_v24, 0  ;;  %vm202_vm3 = vcmask 1041409   ;;  %vm205_vm4 = vcmask 58368   ;;  %vm83_vm5 = vcmask 9216   ;;  %s229_s5 = sshll.u32 %s385_s3, 4  ;;  %s230_s5 = int_to_ptr.vmem [resolvable:$true] %s229_s5 }
  0x18   :  { %v108_v30 = vperm.slane %v92_v23, 0  ;;  %v130_v35 = vperm.slane %v114_v26, 0  ;;  %vm218_vm6 = vcmask 1024   ;;  %vm222_vm7 = vcmask 9224  }
  0x1e   :  { %98 = vperm.xlu0 %249, %v93_v5   ;;  %120 = vperm.xlu1 %250, %v115_v6  }
  0x1f   :  { %144 = vperm.xlu2 %251, %v139_v7  }
  0x26   :  { %105 = vperm.xlu0 %249, %v100_v8   ;;  %127 = vperm.xlu1 %250, %v122_v9  }
  0x27   :  { %151 = vperm.xlu2 %251, %v146_v10  }
  0x79   :  { %v145_v15 = vpop.permute.xlu2 %144 }
  0x7a   :  { %v157_v18 = vmul.f32 %v153_v14, %v145_v15  ;;  %v384_v15 = vmov 0.0  }
  0x7b   :  { %84 = vst.msk [vmem:[#allocation10] sm:$0x3] %vm83_vm5, %v384_v15 }
  0x81   :  { %v152_v34 = vpop.permute.xlu2 %151 }
  0x82   :  { %v158_v41 = vmul.f32 %v154_v32, %v152_v34 }
  0x90   :  { %v99_v19 = vpop.permute.xlu0 %98  ;;  %v121_v20 = vpop.permute.xlu1 %120 }
  0x91   :  { %v111_v21 = vsub.f32 %v107_v16, %v99_v19  ;;  %v133_v22 = vsub.f32 %v129_v17, %v121_v20  ;;  %v216_v16 = vld [vmem:[#allocation10] sm:$0x3] }
  0x93   :  { %vm135_vm1 = vcmp.gt.f32.partialorder %v111_v21, 0.0  ;;  %v161_v25 = vmin.f32 %v111_v21, 0.1 }
  0x94   :  { %v159_v27 = vsel %vm135_vm1, %v157_v18, 0.0 }
  0x95   :  { %v186_v28 = vsel %vm171_vm0, %v159_v27, 0.0  ;;  %v163_v29 = vsub.f32 %v161_v25, %v133_v22 }
  0x96   :  { %v187_v31 = vrot.slane %v186_v28, 4 }
  0x97   :  { %v165_v33 = vmax.f32 %v163_v29, 0.0 }
  0x98   :  { %v188_v36 = vadd.f32 %v187_v31, %v186_v28  ;;  %v106_v37 = vpop.permute.xlu0 %105  ;;  %v128_v38 = vpop.permute.xlu1 %127 }
  0x99   :  { %v167_v39 = vmul.f32 %v165_v33, %v159_v27  ;;  %v112_v40 = vsub.f32 %v108_v30, %v106_v37  ;;  %v134_v44 = vsub.f32 %v130_v35, %v128_v38 }
  0x9a   :  { %v189_v45 = vrot.slane %v188_v36, 2 }
  0x9b   :  { %v169_v42 = vmul.f32 %v167_v39, %v167_v39  ;;  %vm136_vm2 = vcmp.gt.f32.partialorder %v112_v40, 0.0  ;;  %v162_v43 = vmin.f32 %v112_v40, 0.1 }
  0x9c   :  { %v160_v46 = vsel %vm136_vm2, %v158_v41, 0.0  ;;  %v190_v53 = vadd.f32 %v189_v45, %v188_v36 }
  0x9d   :  { %v172_v47 = vsel %vm171_vm0, %v169_v42, 0.0  ;;  %v193_v48 = vsel %vm171_vm0, %v160_v46, 0.0  ;;  %v164_v49 = vsub.f32 %v162_v43, %v134_v44 }
  0x9e   :  { %v173_v50 = vrot.slane %v172_v47, 4  ;;  %v194_v51 = vrot.slane %v193_v48, 4  ;;  %v191_v60 = vrot.slane %v190_v53, 1 }
  0x9f   :  { %v166_v52 = vmax.f32 %v164_v49, 0.0 }
  0xa0   :  { %v174_v54 = vadd.f32 %v173_v50, %v172_v47  ;;  %v195_v55 = vadd.f32 %v194_v51, %v193_v48  ;;  %v192_v2 = vadd.f32 %v191_v60, %v190_v53 }
  0xa1   :  { %v168_v56 = vmul.f32 %v166_v52, %v160_v46 }
  0xa2   :  { %v196_v57 = vrot.slane %v195_v55, 2  ;;  %v175_v61 = vrot.slane %v174_v54, 2 }
  0xa3   :  { %v170_v58 = vmul.f32 %v168_v56, %v168_v56 }
  0xa4   :  { %v197_v59 = vadd.f32 %v196_v57, %v195_v55  ;;  %v176_v4 = vadd.f32 %v175_v61, %v174_v54 }
  0xa5   :  { %v179_v62 = vsel %vm171_vm0, %v170_v58, 0.0 }
  0xa6   :  { %v180_v63 = vrot.slane %v179_v62, 4  ;;  %v198_v0 = vrot.slane %v197_v59, 1  ;;  %v177_v8 = vrot.slane %v176_v4, 1 }
  0xa8   :  { %v181_v1 = vadd.f32 %v180_v63, %v179_v62  ;;  %v199_v3 = vadd.f32 %v198_v0, %v197_v59  ;;  %v178_v11 = vadd.f32 %v177_v8, %v176_v4 }
  0xaa   :  { %v211_v5 = vsel %vm202_vm3, %v199_v3, %v192_v2  ;;  %v182_v6 = vrot.slane %v181_v1, 2 }
  0xab   :  { %v213_v7 = vsel %vm205_vm4, %v211_v5, 0.0 }
  0xac   :  { %214 = vadd.xlane.f32.xlu1 %v213_v7  ;;  %v183_v9 = vadd.f32 %v182_v6, %v181_v1 }
  0xae   :  { %v184_v10 = vrot.slane %v183_v9, 1 }
  0xb0   :  { %v185_v12 = vadd.f32 %v184_v10, %v183_v9 }
  0xb2   :  { %v203_v13 = vsel %vm202_vm3, %v185_v12, %v178_v11 }
  0xb3   :  { %v206_v14 = vsel %vm205_vm4, %v203_v13, 0.0 }
  0xb4   :  { %207 = vadd.xlane.f32.xlu0 %v206_v14 }
 0x11f   :  { %v215_v19 = vpop.xlane.xlu1 %214 }
 0x127   :  { %v208_v17 = vpop.xlane.xlu0 %207 }
 0x128   :  { %v217_v18 = vadd.f32 %v216_v16, %v208_v17 }
 0x12a   :  { %219 = vst.msk [vmem:[#allocation10] sm:$0x3] %vm218_vm6, %v217_v18 }
 0x131   :  { %v220_v20 = vld [vmem:[#allocation10] sm:$0x3] }
 0x132   :  { %v221_v21 = vadd.f32 %v220_v20, %v215_v19 }
 0x134   :  { %223 = vst.msk [vmem:[#allocation10] sm:$0x3] %vm222_vm7, %v221_v21 }
 0x135   :  { %234 = dma.vmem_to_hbm [thread:$0]  %s230_s5, 32, %s232_s19, [#allocation4]  }
 0x136   :  { %378 = dma.done.wait [#allocation4], 32  }
 0x137   :  { %379 = vsyncadd [#allocation4], 4294967264 }
 0x138   :  { %239 = vsyncpa [#allocation3], 1 }
 0x139   :  { %240 = vsyncpa [#allocation6], 1 }
 0x13a   :  { %241 = vsyncpa [#allocation9], 1 }
 0x13b   :  { %242 = vsyncpa [#allocation4], 1 }

</bundles_post_ra>
